<compile_context>
chip_gen: v7x
topology: tpu7x:2x2x1
jax: 0.10.0
libtpu: 0.0.40
codegen_flags: <defaults>
</compile_context>

<pallas_src>
import functools

import jax
import jax.numpy as jnp
from jax import lax
from jax.experimental import pallas as pl
from jax.experimental.pallas import tpu as pltpu


def _leaky_relu(x, negative_slope=0.2):
    # valid for slope in (0,1): max(x, a*x) == leaky_relu(x, a)
    return jnp.maximum(x, negative_slope * x)


def _softplus(x):
    # matches torch.nn.functional.softplus(beta=1, threshold=20)
    return jnp.where(x > 20.0, x, jnp.log1p(jnp.exp(jnp.minimum(x, 20.0))))


def actor_kernel(n_hidden, act_dim, lane_major_out, *refs):
    """Fused MLP actor forward.

    refs = (x,
            w0, b0, ..., w_{n_hidden-1}, b_{n_hidden-1},   # Linear + LeakyReLU(0.2)
            w_head, b_head,                                # fused mean/std projection
            out)

    Weights / activations are bf16, accumulation + pointwise math in f32.
    If lane_major_out: w_head is [2*act_dim, hidden], b_head is [2*act_dim, 1]
    and the output block is [2*act_dim, tile_b] (lane-dense stores).
    Otherwise: w_head is [hidden, 2*act_dim], b_head is [1, 2*act_dim] and the
    output is [B, 2*act_dim].
    """
    h = refs[0][...]                                   # bf16 activations
    idx = 1
    for _ in range(n_hidden):
        w = refs[idx][...]                             # bf16
        b = refs[idx + 1][...]                         # f32
        idx += 2
        z = jnp.dot(h, w, preferred_element_type=jnp.float32) + b
        h = _leaky_relu(z).astype(jnp.bfloat16)

    w_head = refs[idx][...]
    b_head = refs[idx + 1][...]
    out_ref = refs[idx + 2]

    if lane_major_out:
        # out[o, b] = sum_k w_head[o, k] * h[b, k]  (q @ k.T style contraction)
        z = lax.dot_general(w_head, h, (((1,), (1,)), ((), ())),
                            preferred_element_type=jnp.float32) + b_head
        head_idx = lax.broadcasted_iota(jnp.int32, z.shape, 0)
    else:
        z = jnp.dot(h, w_head, preferred_element_type=jnp.float32) + b_head
        head_idx = lax.broadcasted_iota(jnp.int32, z.shape, 1)

    # std lanes (index >= act_dim) get softplus; mean lanes pass through.
    out_ref[...] = jnp.where(head_idx >= act_dim, _softplus(z), z)


def _cast_params(weights, biases, transpose_head):
    """bf16 weights / f32 biases, optionally transposing the head projection."""
    args = []
    for w, b in zip(weights[:-1], biases[:-1]):
        args += [w.astype(jnp.bfloat16), b.astype(jnp.float32)]
    w_last, b_last = weights[-1], biases[-1]
    if transpose_head:
        args += [w_last.T.astype(jnp.bfloat16), b_last.T.astype(jnp.float32)]
    else:
        args += [w_last.astype(jnp.bfloat16), b_last.astype(jnp.float32)]
    return args


def _cost_estimate(batch, weights):
    flops = 0
    bytes_accessed = 0
    for w in weights:
        k, n = w.shape
        flops += 2 * batch * k * n
        bytes_accessed += k * n * 2 + n * 4        # bf16 weight + f32 bias
    bytes_accessed += batch * weights[0].shape[0] * 2      # bf16 input
    bytes_accessed += batch * weights[-1].shape[1] * 4     # f32 output
    transcendentals = 2 * batch * weights[-1].shape[1]     # exp + log1p in softplus
    return pl.CostEstimate(flops=int(flops),
                           transcendentals=int(transcendentals),
                           bytes_accessed=int(bytes_accessed))


def actor_continuous_forward(state, weights, biases, act_dim):
    """Gridless call: every operand fully VMEM-resident, no pipeline overhead.

    Best for small/medium batch (latency-bound regime)."""
    B = state.shape[0]
    n_hidden = len(weights) - 1
    two_a = weights[-1].shape[1]
    args = [state.astype(jnp.bfloat16)] + _cast_params(weights, biases,
                                                       transpose_head=False)
    vmem = pl.BlockSpec(memory_space=pltpu.MemorySpace.VMEM)
    out = pl.pallas_call(
        functools.partial(actor_kernel, n_hidden, act_dim, False),
        out_shape=jax.ShapeDtypeStruct((B, two_a), jnp.float32),
        in_specs=[vmem] * len(args),
        out_specs=vmem,
        compiler_params=pltpu.CompilerParams(vmem_limit_bytes=64 * 1024 * 1024),
        cost_estimate=_cost_estimate(B, weights),
    )(*args)
    return out[:, :act_dim], out[:, act_dim:]


def actor_continuous_forward_batched(state, weights, biases, act_dim, tile_b=512):
    """Batch-tiled call for large B.

    Weights stay VMEM-resident across grid steps (constant index_map,
    single-buffered); output is emitted lane-dense as [2*act_dim, B] so stores
    are full-width vst, then sliced/transposed in the wrapper."""
    B, obs_dim = state.shape
    n_hidden = len(weights) - 1
    two_a = weights[-1].shape[1]

    x = state.astype(jnp.bfloat16)
    pad = (-B) % tile_b
    if pad:
        # TODO(synk): handle the ragged last tile in-kernel (row mask / pl.when
        # on the last program) instead of materializing a padded HBM copy.
        x = jnp.pad(x, ((0, pad), (0, 0)))
    Bp = B + pad

    params = _cast_params(weights, biases, transpose_head=True)
    kernel = functools.partial(actor_kernel, n_hidden, act_dim, True)

    def _run(single_buffered):
        in_specs = [pl.BlockSpec((tile_b, obs_dim), lambda i: (i, 0))]
        for p in params:
            if single_buffered:
                # Constant block index -> DMA'd once; a single buffer suffices
                # (halves static-weight VMEM, matters on v7x's 64 MiB).
                spec = pl.BlockSpec(p.shape, lambda i: (0, 0),
                                    pipeline_mode=pl.Buffered(1))
            else:
                spec = pl.BlockSpec(p.shape, lambda i: (0, 0))
            in_specs.append(spec)
        out_spec = pl.BlockSpec((two_a, tile_b), lambda i: (0, i))
        return pl.pallas_call(
            kernel,
            out_shape=jax.ShapeDtypeStruct((two_a, Bp), jnp.float32),
            grid=(Bp // tile_b,),
            in_specs=in_specs,
            out_specs=out_spec,
            compiler_params=pltpu.CompilerParams(
                dimension_semantics=("parallel",),
                vmem_limit_bytes=64 * 1024 * 1024),
            cost_estimate=_cost_estimate(Bp, weights),
        )(x, *params)

    try:
        out_t = _run(single_buffered=True)
    except Exception:
        # Fallback for jax builds where Buffered(1) isn't accepted by the
        # Mosaic lowering: double-buffered static weights (correct, 2x VMEM).
        out_t = _run(single_buffered=False)

    mean = out_t[:act_dim, :B].T
    std = out_t[act_dim:, :B].T
    return mean, std


def actor_continuous(state, weights, biases, act_dim, tile_b=512):
    """Dispatcher: gridless for small B, gridded 'parallel' path for large B
    (lets v7x shard the batch axis across both TensorCores)."""
    if state.shape[0] >= 2 * tile_b:
        return actor_continuous_forward_batched(state, weights, biases, act_dim, tile_b)
    return actor_continuous_forward(state, weights, biases, act_dim)


def init_actor_params(obs_dim, act_dim, hidden_dim, num_layers, key):
    """Deterministic init mimicking PyTorch's default Linear init (uniform +-1/sqrt(fan_in))."""
    dims = [obs_dim] + [hidden_dim] * (num_layers + 1) + [2 * act_dim]
    weights, biases = [], []
    for i in range(len(dims) - 1):
        key, kw, kb = jax.random.split(key, 3)
        bound = 1.0 / float(dims[i]) ** 0.5
        w = jax.random.uniform(kw, (dims[i], dims[i + 1]), jnp.float32, -bound, bound)
        b = jax.random.uniform(kb, (1, dims[i + 1]), jnp.float32, -bound, bound)
        weights.append(w)
        biases.append(b)
    return weights, biases


def actor_continuous_reference(state, weights, biases, act_dim):
    """Pure f32 JAX reference matching the PyTorch module."""
    h = state
    for w, b in zip(weights[:-1], biases[:-1]):
        h = _leaky_relu(h @ w + b)
    out = h @ weights[-1] + biases[-1]
    return out[:, :act_dim], _softplus(out[:, act_dim:])


if __name__ == "__main__":
    B, obs_dim, act_dim, hidden_dim, num_layers = 8, 16, 4, 32, 2

    key = jax.random.PRNGKey(0)
    key, kx = jax.random.split(key)
    state = jax.random.normal(kx, (B, obs_dim), jnp.float32)
    weights, biases = init_actor_params(obs_dim, act_dim, hidden_dim, num_layers, key)

    # bf16 operands vs f32 reference -> relaxed tolerances.
    ATOL = RTOL = 5e-2

    # gridless path (small batch)
    mean, std = actor_continuous_forward(state, weights, biases, act_dim)
    jax.block_until_ready((mean, std))
    ref_mean, ref_std = actor_continuous_reference(state, weights, biases, act_dim)
    assert mean.shape == (B, act_dim) and std.shape == (B, act_dim)
    assert jnp.allclose(mean, ref_mean, atol=ATOL, rtol=RTOL)
    assert jnp.allclose(std, ref_std, atol=ATOL, rtol=RTOL)
    assert bool(jnp.all(std >= 0.0))

    # batched / lane-dense-output path (large batch, 512-row tiles, 2 grid steps)
    B2, tile_b = 1024, 512
    key, kx2 = jax.random.split(key)
    state2 = jax.random.normal(kx2, (B2, obs_dim), jnp.float32)
    mean2, std2 = actor_continuous(state2, weights, biases, act_dim, tile_b=tile_b)
    jax.block_until_ready((mean2, std2))
    ref_mean2, ref_std2 = actor_continuous_reference(state2, weights, biases, act_dim)
    assert mean2.shape == (B2, act_dim) and std2.shape == (B2, act_dim)
    assert jnp.allclose(mean2, ref_mean2, atol=ATOL, rtol=RTOL)
    assert jnp.allclose(std2, ref_std2, atol=ATOL, rtol=RTOL)
    assert bool(jnp.all(std2 >= 0.0))

    print("KERNEL_OK")
</pallas_src>

<mosaic_0001>
module attributes {stable_mosaic.version = 11 : i64} {
  func.func @actor_kernel(%arg0: memref<8x16xbf16, #tpu.memory_space<vmem>>, %arg1: memref<16x32xbf16, #tpu.memory_space<vmem>>, %arg2: memref<1x32xf32, #tpu.memory_space<vmem>>, %arg3: memref<32x32xbf16, #tpu.memory_space<vmem>>, %arg4: memref<1x32xf32, #tpu.memory_space<vmem>>, %arg5: memref<32x32xbf16, #tpu.memory_space<vmem>>, %arg6: memref<1x32xf32, #tpu.memory_space<vmem>>, %arg7: memref<32x8xbf16, #tpu.memory_space<vmem>>, %arg8: memref<1x8xf32, #tpu.memory_space<vmem>>, %arg9: memref<8x8xf32, #tpu.memory_space<vmem>>) attributes {dimension_semantics = [], scalar_prefetch = 0 : i64, scratch_operands = 0 : i64, tpu.core_type = #tpu.core_type<tc>} {
    %c0 = arith.constant 0 : index
    %c0_0 = arith.constant 0 : index
    %0 = vector.load %arg0[%c0, %c0_0] : memref<8x16xbf16, #tpu.memory_space<vmem>>, vector<8x16xbf16>
    %c0_1 = arith.constant 0 : index
    %c0_2 = arith.constant 0 : index
    %1 = vector.load %arg1[%c0_1, %c0_2] : memref<16x32xbf16, #tpu.memory_space<vmem>>, vector<16x32xbf16>
    %c0_3 = arith.constant 0 : index
    %c0_4 = arith.constant 0 : index
    %2 = vector.load %arg2[%c0_3, %c0_4] : memref<1x32xf32, #tpu.memory_space<vmem>>, vector<1x32xf32>
    %cst = arith.constant dense<0.000000e+00> : vector<8x32xf32>
    %3 = tpu.matmul %0, %1, %cst {dimension_numbers = #tpu.dot_dimension_numbers<[1], [0], [0], [1], [0, 0, 1, 1], [], []>} : vector<8x16xbf16>, vector<16x32xbf16>, vector<8x32xf32> -> vector<8x32xf32>
    %4 = vector.broadcast %2 : vector<1x32xf32> to vector<8x32xf32>
    %5 = arith.addf %3, %4 : vector<8x32xf32>
    %cst_5 = arith.constant 2.000000e-01 : f32
    %6 = vector.broadcast %cst_5 : f32 to vector<8x32xf32>
    %7 = arith.mulf %6, %5 : vector<8x32xf32>
    %8 = arith.maximumf %5, %7 : vector<8x32xf32>
    %9 = arith.truncf %8 : vector<8x32xf32> to vector<8x32xbf16>
    %c0_6 = arith.constant 0 : index
    %c0_7 = arith.constant 0 : index
    %10 = vector.load %arg3[%c0_6, %c0_7] : memref<32x32xbf16, #tpu.memory_space<vmem>>, vector<32x32xbf16>
    %c0_8 = arith.constant 0 : index
    %c0_9 = arith.constant 0 : index
    %11 = vector.load %arg4[%c0_8, %c0_9] : memref<1x32xf32, #tpu.memory_space<vmem>>, vector<1x32xf32>
    %cst_10 = arith.constant dense<0.000000e+00> : vector<8x32xf32>
    %12 = tpu.matmul %9, %10, %cst_10 {dimension_numbers = #tpu.dot_dimension_numbers<[1], [0], [0], [1], [0, 0, 1, 1], [], []>} : vector<8x32xbf16>, vector<32x32xbf16>, vector<8x32xf32> -> vector<8x32xf32>
    %13 = vector.broadcast %11 : vector<1x32xf32> to vector<8x32xf32>
    %14 = arith.addf %12, %13 : vector<8x32xf32>
    %cst_11 = arith.constant 2.000000e-01 : f32
    %15 = vector.broadcast %cst_11 : f32 to vector<8x32xf32>
    %16 = arith.mulf %15, %14 : vector<8x32xf32>
    %17 = arith.maximumf %14, %16 : vector<8x32xf32>
    %18 = arith.truncf %17 : vector<8x32xf32> to vector<8x32xbf16>
    %c0_12 = arith.constant 0 : index
    %c0_13 = arith.constant 0 : index
    %19 = vector.load %arg5[%c0_12, %c0_13] : memref<32x32xbf16, #tpu.memory_space<vmem>>, vector<32x32xbf16>
    %c0_14 = arith.constant 0 : index
    %c0_15 = arith.constant 0 : index
    %20 = vector.load %arg6[%c0_14, %c0_15] : memref<1x32xf32, #tpu.memory_space<vmem>>, vector<1x32xf32>
    %cst_16 = arith.constant dense<0.000000e+00> : vector<8x32xf32>
    %21 = tpu.matmul %18, %19, %cst_16 {dimension_numbers = #tpu.dot_dimension_numbers<[1], [0], [0], [1], [0, 0, 1, 1], [], []>} : vector<8x32xbf16>, vector<32x32xbf16>, vector<8x32xf32> -> vector<8x32xf32>
    %22 = vector.broadcast %20 : vector<1x32xf32> to vector<8x32xf32>
    %23 = arith.addf %21, %22 : vector<8x32xf32>
    %cst_17 = arith.constant 2.000000e-01 : f32
    %24 = vector.broadcast %cst_17 : f32 to vector<8x32xf32>
    %25 = arith.mulf %24, %23 : vector<8x32xf32>
    %26 = arith.maximumf %23, %25 : vector<8x32xf32>
    %27 = arith.truncf %26 : vector<8x32xf32> to vector<8x32xbf16>
    %c0_18 = arith.constant 0 : index
    %c0_19 = arith.constant 0 : index
    %28 = vector.load %arg7[%c0_18, %c0_19] : memref<32x8xbf16, #tpu.memory_space<vmem>>, vector<32x8xbf16>
    %c0_20 = arith.constant 0 : index
    %c0_21 = arith.constant 0 : index
    %29 = vector.load %arg8[%c0_20, %c0_21] : memref<1x8xf32, #tpu.memory_space<vmem>>, vector<1x8xf32>
    %cst_22 = arith.constant dense<0.000000e+00> : vector<8x8xf32>
    %30 = tpu.matmul %27, %28, %cst_22 {dimension_numbers = #tpu.dot_dimension_numbers<[1], [0], [0], [1], [0, 0, 1, 1], [], []>} : vector<8x32xbf16>, vector<32x8xbf16>, vector<8x8xf32> -> vector<8x8xf32>
    %31 = vector.broadcast %29 : vector<1x8xf32> to vector<8x8xf32>
    %32 = arith.addf %30, %31 : vector<8x8xf32>
    %33 = tpu.iota {dimensions = array<i32: 1>} : vector<8x8xi32>
    %c4_i32 = arith.constant 4 : i32
    %34 = vector.broadcast %c4_i32 : i32 to vector<8x8xi32>
    %35 = arith.cmpi sge, %33, %34 : vector<8x8xi32>
    %cst_23 = arith.constant 2.000000e+01 : f32
    %36 = vector.broadcast %cst_23 : f32 to vector<8x8xf32>
    %37 = arith.cmpf ogt, %32, %36 : vector<8x8xf32>
    %cst_24 = arith.constant 2.000000e+01 : f32
    %38 = vector.broadcast %cst_24 : f32 to vector<8x8xf32>
    %39 = arith.minimumf %32, %38 : vector<8x8xf32>
    %40 = math.exp %39 : vector<8x8xf32>
    %41 = math.log1p %40 : vector<8x8xf32>
    %42 = arith.select %37, %32, %41 : vector<8x8xi1>, vector<8x8xf32>
    %43 = arith.select %35, %42, %32 : vector<8x8xi1>, vector<8x8xf32>
    %c0_25 = arith.constant 0 : index
    %c0_26 = arith.constant 0 : index
    %44 = vector.load %arg9[%c0_25, %c0_26] : memref<8x8xf32, #tpu.memory_space<vmem>>, vector<8x8xf32>
    tpu.vector_store %arg9[%c0_25, %c0_26], %43 {strides = array<i32>} : memref<8x8xf32, #tpu.memory_space<vmem>>, vector<8x8xf32>,
    return
  }
}

</mosaic_0001>

<bundles_post_ra>
// kernel: tpu_custom_call.1
= control target key start
LH: loop header
LB: loop body
LE: loop exit
PB: predicated region body
PF: predicated region fallthrough
CT: control target
= control target key end

     0   :  { %14 = vsyncpa [#allocation3], 0  ;;  %s969_s0 = inlined_call_operand.hbm [shape: bf16[8,16], index: 0, kind: input, shape index: {}]   ;;  %s970_s1 = inlined_call_operand.hbm [shape: bf16[16,32], index: 1, kind: input, shape index: {}]   ;;  %s971_s2 = inlined_call_operand.hbm [shape: f32[1,32], index: 2, kind: input, shape index: {}]   ;;  %s972_s3 = inlined_call_operand.hbm [shape: bf16[32,32], index: 3, kind: input, shape index: {}]   ;;  %s973_s4 = inlined_call_operand.hbm [shape: f32[1,32], index: 4, kind: input, shape index: {}]   ;;  %s974_s5 = inlined_call_operand.hbm [shape: bf16[32,32], index: 5, kind: input, shape index: {}]   ;;  %s975_s6 = inlined_call_operand.hbm [shape: f32[1,32], index: 6, kind: input, shape index: {}]   ;;  %s976_s7 = inlined_call_operand.hbm [shape: bf16[32,8], index: 7, kind: input, shape index: {}]   ;;  %s977_s8 = inlined_call_operand.hbm [shape: f32[1,8], index: 8, kind: input, shape index: {}]   ;;  %s978_s9 = inlined_call_operand.hbm [shape: f32[8,8], index: 9, kind: output, shape index: {}]  }
   0x1   :  { %15 = vsyncpa [#allocation6], 0 }
   0x2   :  { %16 = vsyncpa [#allocation9], 0 }
   0x3   :  { %17 = vsyncpa [#allocation12], 0 }
   0x4   :  { %18 = vsyncpa [#allocation15], 0 }
   0x5   :  { %19 = vsyncpa [#allocation4], 0  ;;  %s766_s30 = smov [#allocation5]   ;;  %s534_s13 = scalar_lea.hbm %s970_s1, 128 }
   0x6   :  { %s35_s10 = sshll.u32 %s766_s30, 4  ;;  %p535_p0 = scmp.ne.s32.totalorder %s970_s1, %s534_s13  ;;  %s36_s10 = int_to_ptr.vmem [resolvable:$true] %s35_s10 }
   0x7   :  { %p538_p1 = scmp.lt.u32.totalorder %s534_s13, %s970_s1 }
   0x9   :  { %p540_p2 = pnand %p538_p1, %p535_p0 }
   0xb   :  { %543 = shalt.err (!%p540_p2)
}
   0xc   :  { %s544_s18 = scalar_lea.vmem %s36_s10, 128  ;;  %p549_p4 = scmp.lt.s32.totalorder %s36_s10, %s36_s10 }
   0xd   :  { %p545_p3 = scmp.ne.s32.totalorder %s36_s10, %s544_s18  ;;  %p550_p5 = scmp.lt.s32.totalorder %s544_s18, %s544_s18 }
   0xf   :  { %p551_p6 = por %p550_p5, %p549_p4 }
  0x11   :  { %p552_p7 = pnand %p551_p6, %p545_p3 }
  0x13   :  { %555 = shalt.err (!%p552_p7)
}
  0x14   :  { %s767_s19 = smov 64   ;;  %s768_s20 = smov 4  }
  0x15   :  { %41 = dma.hbm_to_vmem [thread:$0]  %s970_s1, 128, %s36_s10, [#allocation6], %s767_s19, %s767_s19, %s768_s20  }
  0x16   :  { %s769_s23 = smov [#allocation8]   ;;  %s770_s25 = smov [#allocation11]  }
  0x17   :  { %s57_s24 = sshll.u32 %s769_s23, 4  ;;  %s79_s26 = sshll.u32 %s770_s25, 4  ;;  %s58_s24 = int_to_ptr.vmem [resolvable:$true] %s57_s24  ;;  %s80_s26 = int_to_ptr.vmem [resolvable:$true] %s79_s26 }
  0x18   :  { %s556_s29 = scalar_lea.hbm %s972_s3, 256 }
  0x19   :  { %p557_p8 = scmp.ne.s32.totalorder %s972_s3, %s556_s29  ;;  %p560_p9 = scmp.lt.u32.totalorder %s556_s29, %s972_s3 }
  0x1b   :  { %p562_p10 = pnand %p560_p9, %p557_p8 }
  0x1d   :  { %565 = shalt.err (!%p562_p10)
}
  0x1e   :  { %s566_s1 = scalar_lea.vmem %s58_s24, 256  ;;  %p571_p12 = scmp.lt.s32.totalorder %s58_s24, %s58_s24 }
  0x1f   :  { %p567_p11 = scmp.ne.s32.totalorder %s58_s24, %s566_s1  ;;  %p572_p13 = scmp.lt.s32.totalorder %s566_s1, %s566_s1 }
  0x21   :  { %p573_p0 = por %p572_p13, %p571_p12 }
  0x23   :  { %p574_p1 = pnand %p573_p0, %p567_p11 }
  0x25   :  { %577 = shalt.err (!%p574_p1)
}
  0x26   :  { %63 = dma.hbm_to_vmem [thread:$0]  %s972_s3, 256, %s58_s24, [#allocation9], %s767_s19, %s767_s19, %s768_s20  }
  0x27   :  { %s578_s17 = scalar_lea.hbm %s974_s5, 256 }
  0x28   :  { %p579_p2 = scmp.ne.s32.totalorder %s974_s5, %s578_s17  ;;  %p582_p3 = scmp.lt.u32.totalorder %s578_s17, %s974_s5 }
  0x2a   :  { %p584_p4 = pnand %p582_p3, %p579_p2 }
  0x2c   :  { %587 = shalt.err (!%p584_p4)
}
  0x2d   :  { %s588_s25 = scalar_lea.vmem %s80_s26, 256  ;;  %p593_p6 = scmp.lt.s32.totalorder %s80_s26, %s80_s26 }
  0x2e   :  { %p589_p5 = scmp.ne.s32.totalorder %s80_s26, %s588_s25  ;;  %p594_p7 = scmp.lt.s32.totalorder %s588_s25, %s588_s25 }
  0x30   :  { %p595_p8 = por %p594_p7, %p593_p6 }
  0x32   :  { %p596_p9 = pnand %p595_p8, %p589_p5 }
  0x34   :  { %599 = shalt.err (!%p596_p9)
}
  0x35   :  { %85 = dma.hbm_to_vmem [thread:$0]  %s974_s5, 256, %s80_s26, [#allocation12], %s767_s19, %s767_s19, %s768_s20  }
  0x36   :  { %s771_s27 = smov [#allocation14]   ;;  %s772_s29 = smov [#allocation2]  }
  0x37   :  { %s101_s28 = sshll.u32 %s771_s27, 4  ;;  %s26_s30 = sshll.u32 %s772_s29, 4  ;;  %s102_s28 = int_to_ptr.vmem [resolvable:$true] %s101_s28  ;;  %s27_s30 = int_to_ptr.vmem [resolvable:$true] %s26_s30 }
  0x38   :  { %s600_s13 = scalar_lea.hbm %s976_s7, 256 }
  0x39   :  { %p601_p10 = scmp.ne.s32.totalorder %s976_s7, %s600_s13  ;;  %p604_p11 = scmp.lt.u32.totalorder %s600_s13, %s976_s7 }
  0x3b   :  { %p606_p12 = pnand %p604_p11, %p601_p10 }
  0x3d   :  { %609 = shalt.err (!%p606_p12)
}
  0x3e   :  { %s610_s5 = scalar_lea.vmem %s102_s28, 256  ;;  %p615_p0 = scmp.lt.s32.totalorder %s102_s28, %s102_s28 }
  0x3f   :  { %p611_p13 = scmp.ne.s32.totalorder %s102_s28, %s610_s5  ;;  %p616_p1 = scmp.lt.s32.totalorder %s610_s5, %s610_s5 }
  0x41   :  { %p617_p2 = por %p616_p1, %p615_p0 }
  0x43   :  { %p618_p3 = pnand %p617_p2, %p611_p13 }
  0x45   :  { %621 = shalt.err (!%p618_p3)
}
  0x46   :  { %107 = dma.hbm_to_vmem [thread:$0]  %s976_s7, 256, %s102_s28, [#allocation15], %s767_s19, %s767_s19, %s768_s20  }
  0x47   :  { %s622_s21 = scalar_lea.hbm %s969_s0, 64 }
  0x48   :  { %p623_p4 = scmp.ne.s32.totalorder %s969_s0, %s622_s21  ;;  %p626_p5 = scmp.lt.u32.totalorder %s622_s21, %s969_s0 }
  0x4a   :  { %p628_p6 = pnand %p626_p5, %p623_p4 }
  0x4c   :  { %631 = shalt.err (!%p628_p6)
}
  0x4d   :  { %s632_s24 = scalar_lea.vmem %s27_s30, 64  ;;  %p637_p8 = scmp.lt.s32.totalorder %s27_s30, %s27_s30 }
  0x4e   :  { %p633_p7 = scmp.ne.s32.totalorder %s27_s30, %s632_s24  ;;  %p638_p9 = scmp.lt.s32.totalorder %s632_s24, %s632_s24 }
  0x50   :  { %p639_p10 = por %p638_p9, %p637_p8 }
  0x52   :  { %p640_p11 = pnand %p639_p10, %p633_p7 }
  0x54   :  { %643 = shalt.err (!%p640_p11)
}
  0x55   :  { %29 = dma.hbm_to_vmem [thread:$0]  %s969_s0, 64, %s27_s30, [#allocation3]  }
  0x56   :  { %s773_s20 = smov [#allocation7]   ;;  %s774_s28 = smov [#allocation10]  }
  0x57   :  { %s48_s27 = sshll.u32 %s773_s20, 4  ;;  %s70_s29 = sshll.u32 %s774_s28, 4  ;;  %s49_s27 = int_to_ptr.vmem [resolvable:$true] %s48_s27  ;;  %s71_s29 = int_to_ptr.vmem [resolvable:$true] %s70_s29 }
  0x58   :  { %s644_s13 = scalar_lea.hbm %s971_s2, 16 }
  0x59   :  { %p645_p12 = scmp.ne.s32.totalorder %s971_s2, %s644_s13  ;;  %p648_p13 = scmp.lt.u32.totalorder %s644_s13, %s971_s2 }
  0x5b   :  { %p650_p0 = pnand %p648_p13, %p645_p12 }
  0x5d   :  { %653 = shalt.err (!%p650_p0)
}
  0x5e   :  { %s654_s0 = scalar_lea.vmem %s49_s27, 16  ;;  %s658_s30 = scalar_lea.vmem %s49_s27, 32 }
  0x5f   :  { %p655_p1 = scmp.ne.s32.totalorder %s49_s27, %s654_s0  ;;  %p659_p2 = scmp.lt.s32.totalorder %s49_s27, %s49_s27 }
  0x60   :  { %p660_p3 = scmp.lt.s32.totalorder %s658_s30, %s654_s0 }
  0x62   :  { %p661_p4 = por %p660_p3, %p659_p2 }
  0x64   :  { %p662_p5 = pnand %p661_p4, %p655_p1 }
  0x66   :  { %665 = shalt.err (!%p662_p5)
}
  0x67   :  { %51 = dma.hbm_to_vmem [thread:$0]  %s971_s2, 16, %s49_s27, [#allocation6]  }
  0x68   :  { %s666_s18 = scalar_lea.hbm %s973_s4, 16 }
  0x69   :  { %p667_p6 = scmp.ne.s32.totalorder %s973_s4, %s666_s18  ;;  %p670_p7 = scmp.lt.u32.totalorder %s666_s18, %s973_s4 }
  0x6b   :  { %p672_p8 = pnand %p670_p7, %p667_p6 }
  0x6d   :  { %675 = shalt.err (!%p672_p8)
}
  0x6e   :  { %s676_s3 = scalar_lea.vmem %s71_s29, 16  ;;  %s680_s24 = scalar_lea.vmem %s71_s29, 32 }
  0x6f   :  { %p677_p9 = scmp.ne.s32.totalorder %s71_s29, %s676_s3  ;;  %p681_p10 = scmp.lt.s32.totalorder %s71_s29, %s71_s29 }
  0x70   :  { %p682_p11 = scmp.lt.s32.totalorder %s680_s24, %s676_s3 }
  0x72   :  { %p683_p12 = por %p682_p11, %p681_p10 }
  0x74   :  { %p684_p13 = pnand %p683_p12, %p677_p9 }
  0x76   :  { %687 = shalt.err (!%p684_p13)
}
  0x77   :  { %73 = dma.hbm_to_vmem [thread:$0]  %s973_s4, 16, %s71_s29, [#allocation9]  }
  0x78   :  { %s775_s19 = smov [#allocation13]   ;;  %s776_s27 = smov [#allocation16]  }
  0x79   :  { %s92_s20 = sshll.u32 %s775_s19, 4  ;;  %s114_s28 = sshll.u32 %s776_s27, 4  ;;  %s93_s20 = int_to_ptr.vmem [resolvable:$true] %s92_s20  ;;  %s115_s28 = int_to_ptr.vmem [resolvable:$true] %s114_s28 }
  0x7a   :  { %s688_s13 = scalar_lea.hbm %s975_s6, 16 }
  0x7b   :  { %p689_p0 = scmp.ne.s32.totalorder %s975_s6, %s688_s13  ;;  %p692_p1 = scmp.lt.u32.totalorder %s688_s13, %s975_s6 }
  0x7d   :  { %p694_p2 = pnand %p692_p1, %p689_p0 }
  0x7f   :  { %697 = shalt.err (!%p694_p2)
}
  0x80   :  { %s698_s4 = scalar_lea.vmem %s93_s20, 16  ;;  %s702_s29 = scalar_lea.vmem %s93_s20, 32 }
  0x81   :  { %p699_p3 = scmp.ne.s32.totalorder %s93_s20, %s698_s4  ;;  %p703_p4 = scmp.lt.s32.totalorder %s93_s20, %s93_s20 }
  0x82   :  { %p704_p5 = scmp.lt.s32.totalorder %s702_s29, %s698_s4 }
  0x84   :  { %p705_p6 = por %p704_p5, %p703_p4 }
  0x86   :  { %p706_p7 = pnand %p705_p6, %p699_p3 }
  0x88   :  { %709 = shalt.err (!%p706_p7)
}
  0x89   :  { %95 = dma.hbm_to_vmem [thread:$0]  %s975_s6, 16, %s93_s20, [#allocation12]  }
  0x8a   :  { %s710_s16 = scalar_lea.hbm %s977_s8, 16 }
  0x8b   :  { %p711_p8 = scmp.ne.s32.totalorder %s977_s8, %s710_s16  ;;  %p714_p9 = scmp.lt.u32.totalorder %s710_s16, %s977_s8 }
  0x8d   :  { %p716_p10 = pnand %p714_p9, %p711_p8 }
  0x8f   :  { %719 = shalt.err (!%p716_p10)
}
  0x90   :  { %s720_s23 = scalar_lea.vmem %s115_s28, 16  ;;  %s724_s25 = scalar_lea.vmem %s115_s28, 32 }
  0x91   :  { %p721_p11 = scmp.ne.s32.totalorder %s115_s28, %s720_s23  ;;  %p725_p12 = scmp.lt.s32.totalorder %s115_s28, %s115_s28 }
  0x92   :  { %p726_p13 = scmp.lt.s32.totalorder %s724_s25, %s720_s23 }
  0x94   :  { %p727_p0 = por %p726_p13, %p725_p12 }
  0x96   :  { %p728_p1 = pnand %p727_p0, %p721_p11 }
  0x98   :  { %731 = shalt.err (!%p728_p1)
}
  0x99   :  { %117 = dma.hbm_to_vmem [thread:$0]  %s977_s8, 16, %s115_s28, [#allocation15]  }
  0x9a   :  { %754 = dma.done.wait [#allocation3], 64  }
  0x9b   :  { %755 = vsyncadd [#allocation3], 4294967232 }
  0x9c   :  { %756 = dma.done.wait [#allocation6], 144  }
  0x9d   :  { %757 = vsyncadd [#allocation6], 4294967152 }
  0x9e   :  { %758 = dma.done.wait [#allocation9], 272  }
  0x9f   :  { %759 = vsyncadd [#allocation9], 4294967024 }
  0xa0   :  { %760 = dma.done.wait [#allocation12], 272  }
  0xa1   :  { %761 = vsyncadd [#allocation12], 4294967024 }
  0xa2   :  { %762 = dma.done.wait [#allocation15], 272  }
  0xa3   :  { %763 = vsyncadd [#allocation15], 4294967024  ;;  %v777_v0 = vmov 0.0   ;;  %vm778_vm0 = vmmov 0   ;;  %v523_v1 = vld [vmem:[#allocation5] sm:$0xff]   ;;  %vm162_vm1 = vcmask 130048   ;;  %v414_v47 = vlaneseq }
  0xa4   :  { %479 = vmatprep.subr.bf16.mxu0 %v777_v0  ;;  %481 = vmatprep.mubr.msk.bf16.mxu0 %vm778_vm0, %v777_v0  ;;  %v146_v2 = vld [vmem:[#allocation2] sm:$0xf]  ;;  %v524_v3 = vld [vmem:[#allocation8] sm:$0xff]   ;;  %v525_v4 = vld [vmem:[#allocation8 + $0x8] sm:$0xff]   ;;  %vm232_vm2 = vcmask 261120   ;;  %s779_s8 = smov [#allocation17]  }
  0xa5   :  { %485 = vmatprep.subr.bf16.mxu1 %v777_v0  ;;  %489 = vmatprep.mubr.msk.bf16.mxu1 %vm778_vm0, %v777_v0  ;;  %v453_v5 = vld [vmem:[#allocation7] ss:$0 sm:$0xff]  ;;  %v526_v14 = vld [vmem:[#allocation11] sm:$0xff]   ;;  %v456_v16 = vld [vmem:[#allocation10] ss:$0 sm:$0xff]  ;;  %v415_v49 = vand.u32 127, %v414_v47 }
  0xa6   :  { %480 = vmatpush3.bf16.msra.mxu0 %v523_v1  ;;  %486 = vmatpush3.bf16.msra.mxu1 %v524_v3  ;;  %v527_v15 = vld [vmem:[#allocation11 + $0x8] sm:$0xff]   ;;  %v528_v25 = vld [vmem:[#allocation14] sm:$0xff]   ;;  %v529_v26 = vld [vmem:[#allocation14 + $0x8] sm:$0xff]   ;;  %s440_s24 = sshll.u32 %s779_s8, 4  ;;  %vm432_vm6 = vcmask 64512   ;;  %s441_s24 = int_to_ptr.vmem [resolvable:$true] %s440_s24 }
  0xa7   :  { %493 = vmatprep.subr.bf16.mxu0 %v777_v0  ;;  %487 = vmatprep.subr.bf16.mxu1 %v777_v0  ;;  %v460_v27 = vld [vmem:[#allocation13] ss:$0 sm:$0xff]  ;;  %v464_v36 = vld [vmem:[#allocation16] ss:$0 sm:$0xff]  ;;  %vm416_vm3 = vcmp.ge.s32.totalorder %v415_v49, 4  ;;  %s732_s2 = scalar_lea.vmem %s441_s24, 128  ;;  %p737_p3 = scmp.lt.s32.totalorder %s441_s24, %s441_s24 }
  0xa8   :  { %p733_p2 = scmp.ne.s32.totalorder %s441_s24, %s732_s2  ;;  %p738_p4 = scmp.lt.s32.totalorder %s732_s2, %s732_s2 }
  0xa9   :  { %482 = vmatmul.mubr.msk.bf16.vlgmr.msra.gmra.mrb[0].mxu0 %vm162_vm1, %v146_v2 }
  0xaa   :  { %497 = vmatprep.mubr.msk.bf16.mxu0 %vm778_vm0, %v777_v0  ;;  %488 = vmatpush3.bf16.msra.mxu1 %v525_v4  ;;  %p739_p5 = por %p738_p4, %p737_p3 }
  0xab   :  { %501 = vmatprep.subr.bf16.mxu1 %v777_v0  ;;  %494 = vmatpush3.bf16.msra.mxu0 %v526_v14 }
  0xac   :  { %495 = vmatprep.subr.bf16.mxu0 %v777_v0  ;;  %p740_p6 = pnand %p739_p5, %p733_p2 }
  0xaf   :  { %496 = vmatpush3.bf16.msra.mxu0 %v527_v15 }
 0x17c   :  { %v200_v6 = vpop.f32.mrb[0].mxu0 }
 0x17d   :  { %v201_v7 = vadd.f32 %v453_v5, %v200_v6  ;;  %v483_v8 = vpop.f32.mrb[1].mxu0 }
 0x17e   :  { %v203_v9 = vpop.f32.mrb[2].mxu0 }
 0x17f   :  { %v206_v10 = vmul.f32 0.2, %v201_v7  ;;  %v484_v11 = vpop.f32.mrb[3].mxu0 }
 0x181   :  { %v207_v12 = vmax.f32 %v201_v7, %v206_v10 }
 0x183   :  { %v208_v13 = vpack.c.bf16 %v207_v12, %v207_v12 }
 0x185   :  { %490 = vmatmul.mubr.msk.bf16.vlgmr.msra.gmra.mrb[0].mxu1 %vm232_vm2, %v208_v13 }
 0x186   :  { %505 = vmatprep.mubr.msk.bf16.mxu1 %vm778_vm0, %v777_v0  ;;  %502 = vmatpush3.bf16.msra.mxu1 %v528_v25 }
 0x187   :  { %503 = vmatprep.subr.bf16.mxu1 %v777_v0 }
 0x18a   :  { %504 = vmatpush3.bf16.msra.mxu1 %v529_v26 }
 0x258   :  { %v270_v17 = vpop.f32.mrb[0].mxu1 }
 0x259   :  { %v271_v18 = vadd.f32 %v456_v16, %v270_v17  ;;  %v491_v19 = vpop.f32.mrb[1].mxu1 }
 0x25a   :  { %v273_v20 = vpop.f32.mrb[2].mxu1 }
 0x25b   :  { %v276_v21 = vmul.f32 0.2, %v271_v18  ;;  %v492_v22 = vpop.f32.mrb[3].mxu1 }
 0x25d   :  { %v277_v23 = vmax.f32 %v271_v18, %v276_v21 }
 0x25f   :  { %v278_v24 = vpack.c.bf16 %v277_v23, %v277_v23 }
 0x261   :  { %498 = vmatmul.mubr.msk.bf16.vlgmr.msra.gmra.mrb[4].mxu0 %vm232_vm2, %v278_v24 }
 0x334   :  { %v339_v28 = vpop.f32.mrb[4].mxu0 }
 0x335   :  { %v340_v29 = vadd.f32 %v460_v27, %v339_v28  ;;  %v499_v30 = vpop.f32.mrb[5].mxu0 }
 0x336   :  { %v342_v31 = vpop.f32.mrb[6].mxu0 }
 0x337   :  { %v345_v32 = vmul.f32 0.2, %v340_v29  ;;  %v500_v33 = vpop.f32.mrb[7].mxu0 }
 0x339   :  { %v346_v34 = vmax.f32 %v340_v29, %v345_v32 }
 0x33b   :  { %v347_v35 = vpack.c.bf16 %v346_v34, %v346_v34 }
 0x33d   :  { %506 = vmatmul.mubr.msk.bf16.vlgmr.msra.gmra.mrb[4].mxu1 %vm232_vm2, %v347_v35 }
 0x410   :  { %v408_v37 = vpop.f32.mrb[4].mxu1 }
 0x411   :  { %v409_v38 = vadd.f32 %v464_v36, %v408_v37  ;;  %v507_v39 = vpop.f32.mrb[5].mxu1 }
 0x412   :  { %v411_v40 = vpop.f32.mrb[6].mxu1 }
 0x413   :  { %v418_v41 = vmin.f32 %v409_v38, 20.0  ;;  %v508_v42 = vpop.f32.mrb[7].mxu1  ;;  %vm417_vm5 = vcmp.gt.f32.partialorder %v409_v38, 20.0 }
 0x415   :  { %v419_v43 = vmul.f32 1.442695, %v418_v41 }
 0x417   :  { %530 = vpow2.f32 %v419_v43 }
 0x421   :  { %v531_v44 = vpop.eup %530 }
 0x422   :  { %v421_v45 = vadd.f32 1.0, %v531_v44  ;;  %v424_v46 = vmul.f32 -0.5, %v531_v44  ;;  %v427_v50 = vand.u32 2147483647, %v531_v44 }
 0x424   :  { %532 = vlog2.f32 %v421_v45  ;;  %v425_v48 = vadd.f32 1.0, %v424_v46  ;;  %vm428_vm4 = vcmp.lt.f32.partialorder %v427_v50, 0.0004427343 }
 0x426   :  { %v426_v53 = vmul.f32 %v531_v44, %v425_v48 }
 0x42e   :  { %v533_v51 = vpop.eup %532 }
 0x42f   :  { %v423_v52 = vmul.f32 0.6931472, %v533_v51 }
 0x431   :  { %v429_v54 = vsel %vm428_vm4, %v426_v53, %v423_v52 }
 0x432   :  { %v430_v55 = vsel %vm417_vm5, %v409_v38, %v429_v54 }
 0x433   :  { %v431_v56 = vsel %vm416_vm3, %v430_v55, %v409_v38 }
 0x434   :  { %433 = vst.msk [vmem:[#allocation17] sm:$0xff] %vm432_vm6, %v431_v56 }
 0x435   :  { %743 = shalt.err (!%p740_p6)
}
 0x436   :  { %s744_s20 = scalar_lea.hbm %s978_s9, 128 }
 0x437   :  { %p745_p7 = scmp.ne.s32.totalorder %s978_s9, %s744_s20  ;;  %p748_p8 = scmp.lt.u32.totalorder %s744_s20, %s978_s9 }
 0x439   :  { %p750_p9 = pnand %p748_p8, %p745_p7 }
 0x43b   :  { %753 = shalt.err (!%p750_p9)
}
 0x43c   :  { %443 = dma.vmem_to_hbm [thread:$0]  %s441_s24, 128, %s978_s9, [#allocation4]  }
 0x43d   :  { %764 = dma.done.wait [#allocation4], 128  }
 0x43e   :  { %765 = vsyncadd [#allocation4], 4294967168 }
 0x43f   :  { %447 = vsyncpa [#allocation3], 1 }
 0x440   :  { %448 = vsyncpa [#allocation6], 1 }
 0x441   :  { %449 = vsyncpa [#allocation9], 1 }
 0x442   :  { %450 = vsyncpa [#allocation12], 1 }
 0x443   :  { %451 = vsyncpa [#allocation15], 1 }
 0x444   :  { %452 = vsyncpa [#allocation4], 1 }

</bundles_post_ra>
